<compile_context>
chip_gen: v6e
topology: v6e:2x2x1
jax: 0.10.0
libtpu: 0.0.40
codegen_flags: <defaults>
</compile_context>

<pallas_src>
import functools

import jax
import jax.numpy as jnp
from jax import lax
from jax.experimental import pallas as pl
from jax.experimental.pallas import tpu as pltpu

EPS = 1e-5
MAX_LANE_TILE = 1024                    # multiple of 128
BLOCK_BUDGET_BYTES = 8 * 1024 * 1024    # per block; x2 for double-buffering
VMEM_LIMIT_BYTES = 32 * 1024 * 1024     # safe scoped limit on v5e/v6e/v7x


def _round_up(a, b):
    return (a + b - 1) // b * b


def _choose_lane_tile(hw, rows, bytes_per_elem):
    """Largest multiple-of-128 lane tile <= MAX_LANE_TILE fitting the budget."""
    by_budget = BLOCK_BUDGET_BYTES // max(1, rows * bytes_per_elem)
    t = max(128, min(MAX_LANE_TILE, (by_budget // 128) * 128))
    return min(t, _round_up(hw, 128))


# ---------------------------------------------------------------------------
# Kernel A: spatial sum reduction -> pooled sums (B, C, 1)
# ---------------------------------------------------------------------------
def _pool_kernel(x_ref, sum_ref, *, tile, hw, needs_mask):
    k = pl.program_id(1)

    @pl.when(k == 0)
    def _():
        sum_ref[...] = jnp.zeros_like(sum_ref)

    xv = x_ref[...].astype(jnp.float32)                     # (1, C, tile)
    if needs_mask:
        # Ragged tail: out-of-bounds block reads are unspecified -> mask them.
        col = lax.broadcasted_iota(jnp.int32, xv.shape, 2)
        xv = jnp.where(k * tile + col < hw, xv, 0.0)
    sum_ref[...] += jnp.sum(xv, axis=-1, keepdims=True)     # (1, C, 1)


# ---------------------------------------------------------------------------
# Kernel B: tiny MLP (fc -> BN1d -> ReLU) x3 -> last_fc on (B, C) pooled means
# ---------------------------------------------------------------------------
def _mlp_kernel(pooled_ref,
                w0_ref, b0_ref, g0_ref, be0_ref,
                w1_ref, b1_ref, g1_ref, be1_ref,
                w2_ref, b2_ref, g2_ref, be2_ref,
                wl_ref, bl_ref,
                att_ref, *, inv_hw):
    h = pooled_ref[...][:, :, 0] * inv_hw                   # (B, C) mean

    def fc_bn_relu(h, w_ref, b_ref, g_ref, be_ref):
        # Linear (weights pre-transposed to (in, out) by the wrapper).
        h = jnp.dot(h, w_ref[...], preferred_element_type=jnp.float32)
        h = h + b_ref[...]
        # BatchNorm1d, training mode: batch statistics, biased variance.
        mu = jnp.mean(h, axis=0, keepdims=True)
        var = jnp.mean((h - mu) ** 2, axis=0, keepdims=True)
        h = (h - mu) * lax.rsqrt(var + EPS)
        h = h * g_ref[...] + be_ref[...]
        return jnp.maximum(h, 0.0)

    h = fc_bn_relu(h, w0_ref, b0_ref, g0_ref, be0_ref)
    h = fc_bn_relu(h, w1_ref, b1_ref, g1_ref, be1_ref)
    h = fc_bn_relu(h, w2_ref, b2_ref, g2_ref, be2_ref)

    att = jnp.dot(h, wl_ref[...], preferred_element_type=jnp.float32)
    att = att + bl_ref[...]                                  # (B, C)
    att_ref[...] = att[:, :, None]                           # (B, C, 1)


# ---------------------------------------------------------------------------
# Kernel C: broadcast att over the flattened spatial axis (lane-dense stores)
# ---------------------------------------------------------------------------
def _broadcast_kernel(att_ref, out_ref):
    # Pure broadcast store; no slab scratch (store DMA dominates either way).
    out_ref[...] = jnp.broadcast_to(att_ref[...].astype(out_ref.dtype),
                                    out_ref.shape)


# ---------------------------------------------------------------------------
# Wrapper
# ---------------------------------------------------------------------------
def channel_attention(x, params):
    """x: (B, C, H, W). Returns (B, C, H, W) attention map (pre-sigmoid)."""
    B, C, H, W = x.shape
    HW = H * W
    x3 = x.reshape(B, C, HW)                     # free reshape; native dtype
    itemsize = jnp.dtype(x.dtype).itemsize
    params = tuple(params)

    tile_in = _choose_lane_tile(HW, rows=C, bytes_per_elem=itemsize)
    tile_out = _choose_lane_tile(HW, rows=C, bytes_per_elem=itemsize)

    # ---- Phase 1: tiled spatial-sum reduction -> (B, C, 1) sums ----
    pooled = pl.pallas_call(
        functools.partial(_pool_kernel, tile=tile_in, hw=HW,
                          needs_mask=(HW % tile_in != 0)),
        out_shape=jax.ShapeDtypeStruct((B, C, 1), jnp.float32),
        grid_spec=pltpu.PrefetchScalarGridSpec(
            num_scalar_prefetch=0,
            grid=(B, pl.cdiv(HW, tile_in)),
            in_specs=[pl.BlockSpec((1, C, tile_in), lambda b, k: (b, 0, k))],
            out_specs=pl.BlockSpec((1, C, 1), lambda b, k: (b, 0, 0)),
        ),
        compiler_params=pltpu.CompilerParams(
            dimension_semantics=("parallel", "arbitrary"),
            vmem_limit_bytes=VMEM_LIMIT_BYTES,
        ),
    )(x3)

    # ---- Phase 2: tiny MLP on the (B, C) pooled means -> att (B, C, 1) ----
    att = pl.pallas_call(
        functools.partial(_mlp_kernel, inv_hw=1.0 / float(HW)),
        out_shape=jax.ShapeDtypeStruct((B, C, 1), jnp.float32),
        in_specs=[pl.BlockSpec(memory_space=pltpu.MemorySpace.VMEM)]
        * (1 + len(params)),
        out_specs=pl.BlockSpec(memory_space=pltpu.MemorySpace.VMEM),
    )(pooled, *params)

    # ---- Phase 3: stream the broadcast map out, lane-dense tiles ----
    out = pl.pallas_call(
        _broadcast_kernel,
        out_shape=jax.ShapeDtypeStruct((B, C, HW), x.dtype),
        grid_spec=pltpu.PrefetchScalarGridSpec(
            num_scalar_prefetch=0,
            grid=(B, pl.cdiv(HW, tile_out)),
            in_specs=[pl.BlockSpec((1, C, 1), lambda b, s: (b, 0, 0))],
            out_specs=pl.BlockSpec((1, C, tile_out), lambda b, s: (b, 0, s)),
        ),
        compiler_params=pltpu.CompilerParams(
            dimension_semantics=("parallel", "parallel"),
            vmem_limit_bytes=VMEM_LIMIT_BYTES,
        ),
    )(att)

    return out.reshape(B, C, H, W)


# ---------------------------------------------------------------------------
# Parameter init (mirrors the PyTorch module's parameter shapes/defaults)
# ---------------------------------------------------------------------------
def init_params(key, channel, reduction=16, num_layers=3):
    """Linear weights stored pre-transposed as (in, out); uniform(-1/sqrt(fan_in), ..).
    BatchNorm1d: gamma = 1, beta = 0 (PyTorch defaults)."""
    hidden = channel // reduction
    dims = [channel] + [hidden] * num_layers + [channel]

    params = []
    keys = jax.random.split(key, len(dims) - 1)
    for i in range(len(dims) - 1):
        fan_in, fan_out = dims[i], dims[i + 1]
        bound = 1.0 / jnp.sqrt(jnp.float32(fan_in))
        kw, kb = jax.random.split(keys[i])
        w = jax.random.uniform(kw, (fan_in, fan_out), jnp.float32, -bound, bound)
        b = jax.random.uniform(kb, (1, fan_out), jnp.float32, -bound, bound)
        params.append(w)
        params.append(b)
        if i < len(dims) - 2:  # hidden layers have BN; last_fc does not
            params.append(jnp.ones((1, fan_out), jnp.float32))   # gamma
            params.append(jnp.zeros((1, fan_out), jnp.float32))  # beta
    return params


def reference(x, params):
    """Pure-JAX reference of the same forward pass (for correctness check)."""
    B, C, H, W = x.shape
    h = jnp.mean(x.reshape(B, C, H * W).astype(jnp.float32), axis=-1)
    (w0, b0, g0, be0, w1, b1, g1, be1, w2, b2, g2, be2, wl, bl) = params
    for (w, b, g, be) in ((w0, b0, g0, be0), (w1, b1, g1, be1), (w2, b2, g2, be2)):
        h = h @ w + b
        mu = jnp.mean(h, axis=0, keepdims=True)
        var = jnp.mean((h - mu) ** 2, axis=0, keepdims=True)
        h = (h - mu) / jnp.sqrt(var + EPS) * g + be
        h = jnp.maximum(h, 0.0)
    att = h @ wl + bl
    return jnp.broadcast_to(att[:, :, None, None], (B, C, H, W)).astype(x.dtype)


if __name__ == "__main__":
    key = jax.random.PRNGKey(0)
    kx1, kx2, kp = jax.random.split(key, 3)

    # channel=64, reduction=16 -> hidden=4.
    B, C = 2, 64
    params = init_params(kp, channel=C, reduction=16, num_layers=3)

    # Case 1: HW = 1024 (multiple of 128, no ragged tail).
    x1 = jax.random.normal(kx1, (B, C, 32, 32), jnp.float32)
    out1 = jax.block_until_ready(channel_attention(x1, params))
    ref1 = reference(x1, params)
    assert out1.shape == x1.shape
    assert jnp.allclose(out1, ref1, atol=1e-4, rtol=1e-4), "mismatch (divisible HW)"

    # Case 2: HW = 437 (ragged tail) exercises the in-kernel mask and the
    # clipped last-tile writeback (no wrapper pad / slice).
    x2 = jax.random.normal(kx2, (B, C, 19, 23), jnp.float32)
    out2 = jax.block_until_ready(channel_attention(x2, params))
    ref2 = reference(x2, params)
    assert out2.shape == x2.shape
    assert jnp.allclose(out2, ref2, atol=1e-4, rtol=1e-4), "mismatch (ragged HW)"

    print("KERNEL_OK")
</pallas_src>

<mosaic_0001>
module attributes {stable_mosaic.version = 11 : i64} {
  func.func @_pool_kernel(%arg0: i32, %arg1: i32, %arg2: memref<1x64x1024xf32, #tpu.memory_space<vmem>>, %arg3: memref<1x64x1xf32, #tpu.memory_space<vmem>>) attributes {dimension_semantics = [#tpu.dimension_semantics<parallel>, #tpu.dimension_semantics<arbitrary>], iteration_bounds = array<i64: 2, 1>, scalar_prefetch = 0 : i64, scratch_operands = 0 : i64, tpu.core_type = #tpu.core_type<tc>, window_params = [{transform_indices = @transform_0, window_bounds = array<i64: 1, 64, 1024>}, {transform_indices = @transform_1, window_bounds = array<i64: 1, 64, 1>}]} {
    %c0_i32 = arith.constant 0 : i32
    %0 = arith.cmpi eq, %arg1, %c0_i32 : i32
    %1 = arith.extui %0 : i1 to i32
    %c0_i32_0 = arith.constant 0 : i32
    %2 = arith.cmpi ne, %1, %c0_i32_0 : i32
    scf.if %2 {
      %cst_9 = arith.constant 0.000000e+00 : f32
      %9 = vector.broadcast %cst_9 : f32 to vector<1x64x1xf32>
      %c0_10 = arith.constant 0 : index
      %c0_11 = arith.constant 0 : index
      %c0_12 = arith.constant 0 : index
      %10 = vector.load %arg3[%c0_10, %c0_11, %c0_12] : memref<1x64x1xf32, #tpu.memory_space<vmem>>, vector<1x64x1xf32>
      tpu.vector_store %arg3[%c0_10, %c0_11, %c0_12], %9 {strides = array<i32>} : memref<1x64x1xf32, #tpu.memory_space<vmem>>, vector<1x64x1xf32>,
    } else {
    }
    %c0 = arith.constant 0 : index
    %c0_1 = arith.constant 0 : index
    %c0_2 = arith.constant 0 : index
    %3 = vector.load %arg2[%c0, %c0_1, %c0_2] : memref<1x64x1024xf32, #tpu.memory_space<vmem>>, vector<1x64x1024xf32>
    %c0_3 = arith.constant 0 : index
    %c0_4 = arith.constant 0 : index
    %c0_5 = arith.constant 0 : index
    %4 = vector.load %arg3[%c0_3, %c0_4, %c0_5] : memref<1x64x1xf32, #tpu.memory_space<vmem>>, vector<1x64x1xf32>
    %cst = arith.constant dense<0.000000e+00> : vector<1x64xf32>
    %5 = vector.multi_reduction <add>, %3, %cst [2] : vector<1x64x1024xf32> to vector<1x64xf32>
    %6 = vector.shape_cast %5 : vector<1x64xf32> to vector<1x64x1xf32>
    %7 = arith.addf %4, %6 : vector<1x64x1xf32>
    %c0_6 = arith.constant 0 : index
    %c0_7 = arith.constant 0 : index
    %c0_8 = arith.constant 0 : index
    %8 = vector.load %arg3[%c0_6, %c0_7, %c0_8] : memref<1x64x1xf32, #tpu.memory_space<vmem>>, vector<1x64x1xf32>
    tpu.vector_store %arg3[%c0_6, %c0_7, %c0_8], %7 {strides = array<i32>} : memref<1x64x1xf32, #tpu.memory_space<vmem>>, vector<1x64x1xf32>,
    return
  }
  func.func @transform_0(%arg0: i32, %arg1: i32) -> (i32, i32, i32) {
    %c0_i32 = arith.constant 0 : i32
    %c0_i32_0 = arith.constant 0 : i32
    return %arg0, %c0_i32, %arg1 : i32, i32, i32
  }
  func.func @transform_1(%arg0: i32, %arg1: i32) -> (i32, i32, i32) {
    %c0_i32 = arith.constant 0 : i32
    %c0_i32_0 = arith.constant 0 : i32
    %c0_i32_1 = arith.constant 0 : i32
    return %arg0, %c0_i32, %c0_i32_0 : i32, i32, i32
  }
}

</mosaic_0001>

<bundles_post_ra>
// kernel: tpu_custom_call.1
= control target key start
LH: loop header
LB: loop body
LE: loop exit
PB: predicated region body
PF: predicated region fallthrough
CT: control target
= control target key end

     0   :  { %6 = vsyncpa [#allocation3], 0  ;;  %s777_s0 = inlined_call_operand.hbm [shape: f32[2,64,1024], index: 0, kind: input, shape index: {}]   ;;  %s778_s1 = inlined_call_operand.vmem [shape: f32[2,64,1], index: 1, kind: output, shape index: {}]  }
   0x1   :  { %8 = vsyncpa [#allocation3 + $0x1], 0  ;;  %s573_s6 = smov 0   ;;  %s575_s7 = smov 0  }
   0x2   :  { %s577_s8 = smov 0   ;;  %s579_s9 = smov 0  }
   0x3   :  { %s581_s10 = smov 0   ;;  %s583_s11 = smov 0  }
   0x4 LB: > { %s406_s12 = sadd.s32 4294967295, %s557_s11   ;;  %s26_s13 = sadd.s32 1, %s553_s10  ;;  %s557_s11 = sphi %s583_s11, %s14_s11   ;;  %s553_s10 = sphi %s581_s10, %s786_s10   ;;  %s549_s9 = sphi %s579_s9, %s785_s9   ;;  %s545_s8 = sphi %s577_s8, %s784_s8   ;;  %s541_s7 = sphi %s575_s7, %s783_s7   ;;  %s537_s6 = sphi %s573_s6, %s782_s6  }
   0x5   : > { %p28_p0 = scmp.ge.s32.totalorder %s26_s13, 2  ;;  %s35_s14 = sadd.s32 1, %s545_s8 }
   0x6   : > { %p42_p1 = scmp.ne.s32.totalorder %s545_s8, %s541_s7  ;;  %p43_p2 = scmp.eq.s32.totalorder %s557_s11, 0 }
   0x7   : > { %s788_s13 = smov (%p28_p0, %s26_s13), 0  ;;  %p48_p4 = scmp.ne.s32.totalorder %s541_s7, %s537_s6 }
   0x8   : > { %p609_p3 = por %p43_p2, %p42_p1  ;;  %s30_s16 = ssub.s32 %s553_s10, %s788_s13 }
   0x9   : > { %p49_p5 = scmp.eq.s32.totalorder %s406_s12, 0  ;;  %p33_p6 = scmp.eq.s32.totalorder %s30_s16, 0 }
   0xa   : > { %p427_p8 = scmp.lt.s32.totalorder %s557_s11, 2  ;;  %s98_s19 = sand.u32 1, %s545_s8  }
   0xb   : > { %p616_p7 = por %p49_p5, %p48_p4  ;;  %s419_s20 = sshll.u32 %s553_s10, 13 }
   0xc   : > { %s622_s18 = scalar_select %p33_p6, %s545_s8, %s35_s14  }
   0xd   : > { %s410_s21 = sshll.u32 %s98_s19, 9  ;;  %s110_s24 = scalar_lea.hbm %s777_s0, %s419_s20 }
   0xe   : > { %s102_s25 = scalar_lea.vmem [#allocation2], %s410_s21  ;;  %p631_p9 = pnand %p427_p8, %p609_p3 }
   0xf   : > { %s111_s26 = sshll.u32 %s102_s25, 4  ;;  %s99_s28 = scalar_lea.sflag [#allocation3], %s98_s19  ;;  %s112_s26 = int_to_ptr.vmem [resolvable:$true] %s111_s26 }
  0x10   : > { %p481_p10 = pneg %p631_p9  ;;  %s492_s29 = scalar_lea.vmem %s112_s26, 8192 }
  0x11   : > { %p493_p11 = scmp.ne.s32.totalorder %s112_s26, %s492_s29  ;;  %s559_s30 = smov [#allocation2]  }
  0x12   : > { %s497_s2 = sshll.u32 %s559_s30, 4  ;;  %s498_s2 = int_to_ptr.vmem [resolvable:$false] %s497_s2 }
  0x13   : > { %p495_p12 = pnand %p493_p11, %p481_p10  ;;  %s499_s3 = scalar_lea.vmem %s498_s2, 16384 }
  0x14   : > { %p500_p0 = scmp.lt.s32.totalorder %s112_s26, %s498_s2  ;;  %p501_p1 = scmp.lt.s32.totalorder %s499_s3, %s492_s29 }
  0x15   : > { %p496_p13 = pneg %p495_p12 }
  0x16   : > { %p502_p2 = por %p501_p1, %p500_p0 }
  0x18   : > { %p503_p3 = pnand %p502_p2, %p496_p13 }
  0x1a   : > { %506 = shalt.err (!%p503_p3)
}
  0x1b   : > { %s560_s4 = smov 1024   ;;  %s561_s5 = smov 64  }
  0x1c   : > { %426 = dma.hbm_to_vmem [thread:$0]  (!%p631_p9), %s110_s24, 8192, %s112_s26, %s99_s28, %s560_s4, %s560_s4, %s561_s5  }
  0x1d   : > { %p413_p4 = scmp.ge.s32.totalorder %s557_s11, 1  ;;  %p119_p5 = scmp.lt.s32.totalorder %s557_s11, 3 }
  0x1f   : > { %p120_p6 = pnand %p413_p4, %p119_p5 }
  0x20   : > { %s125_s6 = sand.u32 (!%p120_p6), 1, %s541_s7  }
  0x21   : > { %123 = sbr.rel (%p120_p6) target bundleno = 214 (0xd6), region = 24  ;;  %s414_s12 = sshll.u32 (!%p120_p6), %s125_s6, 9 }
  0x22   : > { %s126_s14 = scalar_lea.sflag (!%p120_p6), [#allocation3], %s125_s6  ;;  %s642_s15 = scalar_lea.vmem (!%p120_p6), [#allocation2], %s414_s12 }
  0x26   : > { %532 = dma.done.wait (%p616_p7), %s126_s14, 8192  }
  0x27   : > { %534 = vsyncadd (%p616_p7), %s126_s14, 4294959104  ;;  %p149_p8 = scmp.lt.s32.totalorder %s549_s9, 1  ;;  %vm158_vm0 = vcmask 7168   ;;  %v562_v0 = vmov 0.0   ;;  %v183_v1 = vld [vmem:[%s642_s15 + $0x80] sm:$0xff]  ;;  %v184_v2 = vld [vmem:[%s642_s15 + $0x88] sm:$0xff] }
  0x28   : > { %v185_v3 = vld [vmem:[%s642_s15 + $0x90] sm:$0xff]  ;;  %v257_v4 = vadd.f32 %v184_v2, %v183_v1  ;;  %v186_v5 = vld [vmem:[%s642_s15 + $0x98] sm:$0xff]  ;;  %v167_v6 = vld [vmem:[%s642_s15] sm:$0xff] }
  0x29   : > { %s790_s9 = smov (!%p149_p8, %s549_s9), 1  ;;  %v168_v8 = vld [vmem:[%s642_s15 + $0x8] sm:$0xff]  ;;  %v169_v9 = vld [vmem:[%s642_s15 + $0x10] sm:$0xff]  ;;  %v187_v10 = vld [vmem:[%s642_s15 + $0xa0] sm:$0xff] }
  0x2a   : > { %s420_s16 = sshll.u32 %s790_s9, 6  ;;  %v258_v7 = vadd.f32 %v257_v4, %v185_v3  ;;  %v239_v11 = vadd.f32 %v168_v8, %v167_v6  ;;  %v170_v13 = vld [vmem:[%s642_s15 + $0x18] sm:$0xff]  ;;  %v191_v14 = vld [vmem:[%s642_s15 + $0xc0] sm:$0xff]  ;;  %v192_v15 = vld [vmem:[%s642_s15 + $0xc8] sm:$0xff] }
  0x2b   : > { %s653_s21 = scalar_lea.vmem %s778_s1, %s420_s16  ;;  %v188_v16 = vld [vmem:[%s642_s15 + $0xa8] sm:$0xff]  ;;  %v193_v18 = vld [vmem:[%s642_s15 + $0xd0] sm:$0xff]  ;;  %v266_v19 = vadd.f32 %v192_v15, %v191_v14  ;;  %v171_v22 = vld [vmem:[%s642_s15 + $0x20] sm:$0xff] }
  0x2c   : > { %161 = vst.msk [vmem:[%s653_s21 + $0x10] sm:$0xff] %vm158_vm0, %v562_v0  ;;  %159 = vst.msk [vmem:[%s653_s21] sm:$0xff] %vm158_vm0, %v562_v0  ;;  %v259_v12 = vadd.f32 %v258_v7, %v186_v5  ;;  %v240_v17 = vadd.f32 %v239_v11, %v169_v9  ;;  %v189_v20 = vld [vmem:[%s642_s15 + $0xb0] sm:$0xff]  ;;  %v194_v23 = vld [vmem:[%s642_s15 + $0xd8] sm:$0xff] }
  0x2d   : > { %160 = vst.msk [vmem:[%s653_s21 + $0x8] sm:$0xff] %vm158_vm0, %v562_v0  ;;  %162 = vst.msk [vmem:[%s653_s21 + $0x18] sm:$0xff] %vm158_vm0, %v562_v0  ;;  %v267_v25 = vadd.f32 %v266_v19, %v193_v18  ;;  %v175_v26 = vld [vmem:[%s642_s15 + $0x40] sm:$0xff]  ;;  %v176_v27 = vld [vmem:[%s642_s15 + $0x48] sm:$0xff] }
  0x2e   : > { %163 = vst.msk [vmem:[%s653_s21 + $0x20] sm:$0xff] %vm158_vm0, %v562_v0  ;;  %164 = vst.msk [vmem:[%s653_s21 + $0x28] sm:$0xff] %vm158_vm0, %v562_v0  ;;  %v260_v21 = vadd.f32 %v259_v12, %v187_v10  ;;  %v241_v24 = vadd.f32 %v240_v17, %v170_v13  ;;  %v177_v28 = vld [vmem:[%s642_s15 + $0x50] sm:$0xff]  ;;  %v190_v29 = vld [vmem:[%s642_s15 + $0xb8] sm:$0xff]  ;;  %v248_v33 = vadd.f32 %v176_v27, %v175_v26 }
  0x2f   : > { %165 = vst.msk [vmem:[%s653_s21 + $0x30] sm:$0xff] %vm158_vm0, %v562_v0  ;;  %166 = vst.msk [vmem:[%s653_s21 + $0x38] sm:$0xff] %vm158_vm0, %v562_v0  ;;  %v172_v31 = vld [vmem:[%s642_s15 + $0x28] sm:$0xff]  ;;  %v195_v32 = vld [vmem:[%s642_s15 + $0xe0] sm:$0xff]  ;;  %v268_v36 = vadd.f32 %v267_v25, %v194_v23 }
  0x30   : > { %v261_v30 = vadd.f32 %v260_v21, %v188_v16  ;;  %v173_v34 = vld [vmem:[%s642_s15 + $0x30] sm:$0xff]  ;;  %v242_v35 = vadd.f32 %v241_v24, %v171_v22  ;;  %v178_v37 = vld [vmem:[%s642_s15 + $0x58] sm:$0xff]  ;;  %v207_v38 = vld [vmem:[%s642_s15 + $0x140] sm:$0xff]  ;;  %v249_v41 = vadd.f32 %v248_v33, %v177_v28 }
  0x31   : > { %v196_v40 = vld [vmem:[%s642_s15 + $0xe8] sm:$0xff]  ;;  %v209_v43 = vld [vmem:[%s642_s15 + $0x150] sm:$0xff]  ;;  %v174_v44 = vld [vmem:[%s642_s15 + $0x38] sm:$0xff]  ;;  %v269_v47 = vadd.f32 %v268_v36, %v195_v32 }
  0x32   : > { %v262_v39 = vadd.f32 %v261_v30, %v189_v20  ;;  %v208_v42 = vld [vmem:[%s642_s15 + $0x148] sm:$0xff]  ;;  %v243_v45 = vadd.f32 %v242_v35, %v172_v31  ;;  %v197_v46 = vld [vmem:[%s642_s15 + $0xf0] sm:$0xff]  ;;  %v179_v48 = vld [vmem:[%s642_s15 + $0x60] sm:$0xff]  ;;  %v250_v51 = vadd.f32 %v249_v41, %v178_v37 }
  0x33   : > { %v284_v49 = vadd.f32 %v208_v42, %v207_v38  ;;  %v210_v52 = vld [vmem:[%s642_s15 + $0x158] sm:$0xff]  ;;  %v199_v53 = vld [vmem:[%s642_s15 + $0x100] sm:$0xff]  ;;  %v200_v54 = vld [vmem:[%s642_s15 + $0x108] sm:$0xff]  ;;  %v270_v57 = vadd.f32 %v269_v47, %v196_v40 }
  0x34   : > { %v263_v50 = vadd.f32 %v262_v39, %v190_v29  ;;  %v244_v55 = vadd.f32 %v243_v45, %v173_v34  ;;  %v198_v56 = vld [vmem:[%s642_s15 + $0xf8] sm:$0xff]  ;;  %v180_v58 = vld [vmem:[%s642_s15 + $0x68] sm:$0xff]  ;;  %v201_v60 = vld [vmem:[%s642_s15 + $0x110] sm:$0xff]  ;;  %v275_v61 = vadd.f32 %v200_v54, %v199_v53  ;;  %v251_v63 = vadd.f32 %v250_v51, %v179_v48 }
  0x35   : > { %v285_v59 = vadd.f32 %v284_v49, %v209_v43  ;;  %v181_v62 = vld [vmem:[%s642_s15 + $0x70] sm:$0xff]  ;;  %v211_v0 = vld [vmem:[%s642_s15 + $0x160] sm:$0xff]  ;;  %v202_v1 = vld [vmem:[%s642_s15 + $0x118] sm:$0xff]  ;;  %v271_v3 = vadd.f32 %v270_v57, %v197_v46 }
  0x36   : > { %264 = vadd.xlane.f32.xlu1 %v263_v50  ;;  %v245_v2 = vadd.f32 %v244_v55, %v174_v44  ;;  %v276_v5 = vadd.f32 %v275_v61, %v201_v60  ;;  %v223_v6 = vld [vmem:[%s642_s15 + $0x1c0] sm:$0xff]  ;;  %v224_v7 = vld [vmem:[%s642_s15 + $0x1c8] sm:$0xff]  ;;  %v225_v8 = vld [vmem:[%s642_s15 + $0x1d0] sm:$0xff]  ;;  %v252_v10 = vadd.f32 %v251_v63, %v180_v58 }
  0x37   : > { %v286_v4 = vadd.f32 %v285_v59, %v210_v52  ;;  %v182_v9 = vld [vmem:[%s642_s15 + $0x78] sm:$0xff]  ;;  %v212_v11 = vld [vmem:[%s642_s15 + $0x168] sm:$0xff]  ;;  %v203_v12 = vld [vmem:[%s642_s15 + $0x120] sm:$0xff]  ;;  %v302_v13 = vadd.f32 %v224_v7, %v223_v6  ;;  %v272_v14 = vadd.f32 %v271_v3, %v198_v56 }
  0x38   : > { %246 = vadd.xlane.f32.xlu0 %v245_v2  ;;  %v213_v15 = vld [vmem:[%s642_s15 + $0x170] sm:$0xff]  ;;  %v277_v17 = vadd.f32 %v276_v5, %v202_v1  ;;  %v226_v18 = vld [vmem:[%s642_s15 + $0x1d8] sm:$0xff]  ;;  %v215_v19 = vld [vmem:[%s642_s15 + $0x180] sm:$0xff]  ;;  %v253_v20 = vadd.f32 %v252_v10, %v181_v62 }
  0x39   : > { %v287_v16 = vadd.f32 %v286_v4, %v211_v0  ;;  %v204_v21 = vld [vmem:[%s642_s15 + $0x128] sm:$0xff]  ;;  %v303_v22 = vadd.f32 %v302_v13, %v225_v8  ;;  %v217_v24 = vld [vmem:[%s642_s15 + $0x190] sm:$0xff]  ;;  %v227_v27 = vld [vmem:[%s642_s15 + $0x1e0] sm:$0xff] }
  0x3a   : > { %v216_v23 = vld [vmem:[%s642_s15 + $0x188] sm:$0xff]  ;;  %273 = vadd.xlane.f32.xlu1 %v272_v14  ;;  %v278_v26 = vadd.f32 %v277_v17, %v203_v12  ;;  %v254_v29 = vadd.f32 %v253_v20, %v182_v9  ;;  %v214_v30 = vld [vmem:[%s642_s15 + $0x178] sm:$0xff]  ;;  %v205_v31 = vld [vmem:[%s642_s15 + $0x130] sm:$0xff] }
  0x3b   : > { %v288_v25 = vadd.f32 %v287_v16, %v212_v11  ;;  %v293_v28 = vadd.f32 %v216_v23, %v215_v19  ;;  %v304_v32 = vadd.f32 %v303_v22, %v226_v18  ;;  %v218_v33 = vld [vmem:[%s642_s15 + $0x198] sm:$0xff]  ;;  %v228_v36 = vld [vmem:[%s642_s15 + $0x1e8] sm:$0xff]  ;;  %v219_v40 = vld [vmem:[%s642_s15 + $0x1a0] sm:$0xff] }
  0x3c   : > { %v279_v35 = vadd.f32 %v278_v26, %v204_v21  ;;  %255 = vadd.xlane.f32.xlu0 %v254_v29  ;;  %v206_v38 = vld [vmem:[%s642_s15 + $0x138] sm:$0xff]  ;;  %v229_v43 = vld [vmem:[%s642_s15 + $0x1f0] sm:$0xff]  ;;  %v220_v46 = vld [vmem:[%s642_s15 + $0x1a8] sm:$0xff] }
  0x3d   : > { %v289_v34 = vadd.f32 %v288_v25, %v213_v15  ;;  %v294_v37 = vadd.f32 %v293_v28, %v217_v24  ;;  %v305_v39 = vadd.f32 %v304_v32, %v227_v27  ;;  %v230_v48 = vld [vmem:[%s642_s15 + $0x1f8] sm:$0xff]  ;;  %v221_v51 = vld [vmem:[%s642_s15 + $0x1b0] sm:$0xff]  ;;  %v231_v60 = vld [vmem:[%s653_s21] sm:$0xff] }
  0x3e   : > { %v280_v42 = vadd.f32 %v279_v35, %v205_v31  ;;  %v222_v54 = vld [vmem:[%s642_s15 + $0x1b8] sm:$0xff]  ;;  %v233_v57 = vld [vmem:[%s653_s21 + $0x10] sm:$0xff]  ;;  %v232_v2 = vld [vmem:[%s653_s21 + $0x8] sm:$0xff] }
  0x3f   : > { %v290_v41 = vadd.f32 %v289_v34, %v214_v30  ;;  %v295_v44 = vadd.f32 %v294_v37, %v218_v33  ;;  %v306_v45 = vadd.f32 %v305_v39, %v228_v36  ;;  %v234_v62 = vld [vmem:[%s653_s21 + $0x18] sm:$0xff]  ;;  %v236_v5 = vld [vmem:[%s653_s21 + $0x28] sm:$0xff]  ;;  %v235_v7 = vld [vmem:[%s653_s21 + $0x20] sm:$0xff] }
  0x40   : > { %v281_v47 = vadd.f32 %v280_v42, %v206_v38  ;;  %v238_v11 = vld [vmem:[%s653_s21 + $0x38] sm:$0xff]  ;;  %v237_v14 = vld [vmem:[%s653_s21 + $0x30] sm:$0xff] }
  0x41   : > { %291 = vadd.xlane.f32.xlu1 %v290_v41  ;;  %v296_v49 = vadd.f32 %v295_v44, %v219_v40  ;;  %v307_v50 = vadd.f32 %v306_v45, %v229_v43 }
  0x42   : > { %282 = vadd.xlane.f32.xlu0 %v281_v47 }
  0x43   : > { %v297_v52 = vadd.f32 %v296_v49, %v220_v46  ;;  %v308_v53 = vadd.f32 %v307_v50, %v230_v48 }
  0x45   : > { %v298_v55 = vadd.f32 %v297_v52, %v221_v51  ;;  %309 = vadd.xlane.f32.xlu1 %v308_v53 }
  0x47   : > { %v299_v56 = vadd.f32 %v298_v55, %v222_v54 }
  0x49   : > { %300 = vadd.xlane.f32.xlu0 %v299_v56 }
  0xbf   : > { %v265_v58 = vpop.xlane.xlu1 %264 }
  0xc0   : > { %v313_v59 = vadd.f32 %v265_v58, %v233_v57 }
  0xc1   : > { %v247_v61 = vpop.xlane.xlu0 %246 }
  0xc2   : > { %322 = vst.msk [vmem:[%s653_s21 + $0x10] sm:$0xff] %vm158_vm0, %v313_v59  ;;  %v311_v63 = vadd.f32 %v247_v61, %v231_v60 }
  0xc3   : > { %v274_v0 = vpop.xlane.xlu1 %273 }
  0xc4   : > { %320 = vst.msk [vmem:[%s653_s21] sm:$0xff] %vm158_vm0, %v311_v63  ;;  %v314_v1 = vadd.f32 %v274_v0, %v234_v62 }
  0xc5   : > { %v256_v3 = vpop.xlane.xlu0 %255 }
  0xc6   : > { %323 = vst.msk [vmem:[%s653_s21 + $0x18] sm:$0xff] %vm158_vm0, %v314_v1  ;;  %v312_v4 = vadd.f32 %v256_v3, %v232_v2 }
  0xc8   : > { %321 = vst.msk [vmem:[%s653_s21 + $0x8] sm:$0xff] %vm158_vm0, %v312_v4 }
  0xca   : > { %v292_v6 = vpop.xlane.xlu1 %291 }
  0xcb   : > { %v316_v8 = vadd.f32 %v292_v6, %v236_v5  ;;  %v283_v9 = vpop.xlane.xlu0 %282 }
  0xcc   : > { %v315_v10 = vadd.f32 %v283_v9, %v235_v7 }
  0xcd   : > { %325 = vst.msk [vmem:[%s653_s21 + $0x28] sm:$0xff] %vm158_vm0, %v316_v8 }
  0xce   : > { %324 = vst.msk [vmem:[%s653_s21 + $0x20] sm:$0xff] %vm158_vm0, %v315_v10  ;;  %v310_v12 = vpop.xlane.xlu1 %309 }
  0xcf   : > { %v318_v13 = vadd.f32 %v310_v12, %v238_v11 }
  0xd1   : > { %327 = vst.msk [vmem:[%s653_s21 + $0x38] sm:$0xff] %vm158_vm0, %v318_v13 }
  0xd2   : > { %v301_v15 = vpop.xlane.xlu0 %300 }
  0xd3   : > { %v317_v16 = vadd.f32 %v301_v15, %v237_v14 }
  0xd5   : > { %326 = vst.msk [vmem:[%s653_s21 + $0x30] sm:$0xff] %vm158_vm0, %v317_v16 }
  0xd6 PF: > { %s14_s11 = sadd.s32 1, %s557_s11   ;;  %s782_s6 = smov %s541_s7 }
  0xd7   : > { %p11_p7 = scmp.ge.s32.totalorder %s14_s11, 4   ;;  %s783_s7 = smov %s545_s8 }
  0xd8   : > { %s784_s8 = smov %s622_s18  ;;  %s785_s9 = smov %s553_s10 }
  0xd9   : > { %s786_s10 = smov %s788_s13  ;;  %13 = sbr.rel (!%p11_p7) target bundleno = 4 (0x4), region = 68 }
  0xde   :  { %349 = vsyncpa [#allocation3], 1 }
  0xdf   :  { %351 = vsyncpa [#allocation3 + $0x1], 1 }

</bundles_post_ra>
